<compile_context>
chip_gen: v7x
topology: tpu7x:2x2x1
jax: 0.10.0
libtpu: 0.0.40
codegen_flags: <defaults>
</compile_context>

<pallas_src>
import numpy as np
import jax
import jax.numpy as jnp
from jax import lax
from jax.experimental import pallas as pl
from jax.experimental.pallas import tpu as pltpu


def _round_up(x: int, m: int) -> int:
    return ((x + m - 1) // m) * m


def _make_triangular_kernel(omega: float, n: int):
    # Fold 8/pi^2 into the per-harmonic coefficients (scalars, compile time).
    scale = 8.0 / (np.pi ** 2)
    coefs = [scale * ((-1.0) ** i) / float((2 * i + 1) ** 2) for i in range(n)]

    def kernel(x_ref, w_ref, ob_ref, o_ref):
        # MXU matmul: x [tm, K] contracted with w [tn, K] on K -> [tm, tn].
        acc = lax.dot_general(
            x_ref[...], w_ref[...],
            dimension_numbers=(((1,), (1,)), ((), ())),
            preferred_element_type=jnp.float32)

        # ob_ref already holds omega * bias  -> single fused combine.
        arg = omega * acc + ob_ref[...]            # broadcast [1, tn]

        # One EUP sin; remaining odd harmonics via VPU recurrence.
        s = jnp.sin(arg)
        out = coefs[0] * s
        if n > 1:
            c2x2 = 2.0 - 4.0 * s * s               # 2*cos(2*arg)
            prev_prev = -s                         # sin(-arg)
            prev = s                               # sin(arg)
            for i in range(1, n):
                cur = c2x2 * prev - prev_prev      # sin((2i+1)*arg)
                out = out + coefs[i] * cur
                prev_prev, prev = prev, cur

        o_ref[...] = out.astype(o_ref.dtype)

    return kernel


def triangular_layer(x, weight, bias, *, omega=30.0, n=2, tm=256, tn=512):
    """x: [..., in_f], weight: [out_f, in_f], bias: [out_f] -> [..., out_f]."""
    in_f = x.shape[-1]
    out_f = weight.shape[0]
    lead_shape = x.shape[:-1]
    x2d = x.reshape(-1, in_f)
    B = x2d.shape[0]

    # Lane/sublane-aligned tiles, clamped to the (padded) problem size.
    tm = min(tm, _round_up(B, 8))
    tn = min(tn, _round_up(out_f, 128))
    Bp = _round_up(B, tm)
    Np = _round_up(out_f, tn)

    xp = x2d.astype(jnp.float32)
    if Bp != B:
        xp = jnp.pad(xp, ((0, Bp - B), (0, 0)))
    wp = weight.astype(jnp.float32)                 # stays [out_f, in_f]
    if Np != out_f:
        wp = jnp.pad(wp, ((0, Np - out_f), (0, 0)))
    ob = (float(omega) * bias.astype(jnp.float32)).reshape(1, out_f)
    if Np != out_f:
        ob = jnp.pad(ob, ((0, 0), (0, Np - out_f)))

    kernel = _make_triangular_kernel(float(omega), int(n))

    out = pl.pallas_call(
        kernel,
        out_shape=jax.ShapeDtypeStruct((Bp, Np), jnp.float32),
        grid_spec=pltpu.PrefetchScalarGridSpec(
            num_scalar_prefetch=0,
            grid=(Bp // tm, Np // tn),
            in_specs=[
                pl.BlockSpec((tm, in_f), lambda i, j: (i, 0)),   # x tile
                pl.BlockSpec((tn, in_f), lambda i, j: (j, 0)),   # weight tile
                pl.BlockSpec((1, tn), lambda i, j: (0, j)),      # omega*bias
            ],
            out_specs=pl.BlockSpec((tm, tn), lambda i, j: (i, j)),
        ),
        compiler_params=pltpu.CompilerParams(
            dimension_semantics=("parallel", "parallel"),
            vmem_limit_bytes=32 * 1024 * 1024),
    )(xp, wp, ob)

    out = out[:B, :out_f]
    return out.reshape(*lead_shape, out_f)


def siren_init(key, out_features, in_features, is_first=False, omega=1.0):
    if is_first:
        bound = 1.0 / in_features
    else:
        bound = np.sqrt(6.0 / in_features) / omega
    return jax.random.uniform(
        key, (out_features, in_features), jnp.float32,
        minval=-bound, maxval=bound)


def _reference(x, weight, bias, omega, n):
    arg = omega * (x @ weight.T + bias)
    idx = jnp.arange(1, 2 * n, 2, dtype=jnp.float32)
    coef = ((-1.0) ** ((idx - 1) // 2)) / idx ** 2
    return (coef[None, None, :]
            * jnp.sin(idx[None, None, :] * arg[..., None])).sum(-1) * (8.0 / jnp.pi ** 2)


if __name__ == "__main__":
    key = jax.random.PRNGKey(0)

    # Case 1: small shapes consistent with the module (Linear 32 -> 32, n=2).
    B, IN_F, OUT_F, OMEGA, N = 8, 32, 32, 30.0, 2
    kx, kw, kb, key = jax.random.split(key, 4)
    x = jax.random.normal(kx, (B, IN_F), jnp.float32)
    weight = siren_init(kw, OUT_F, IN_F, is_first=False, omega=OMEGA)
    bb = 1.0 / np.sqrt(IN_F)
    bias = jax.random.uniform(kb, (OUT_F,), jnp.float32, minval=-bb, maxval=bb)

    out = triangular_layer(x, weight, bias, omega=OMEGA, n=N)
    jax.block_until_ready(out)
    np.testing.assert_allclose(np.asarray(out),
                               np.asarray(_reference(x, weight, bias, OMEGA, N)),
                               rtol=1e-5, atol=1e-5)

    # Case 2: slightly wider layer + n=3 to exercise the harmonic recurrence
    # and a multi-column output tile.
    B2, IN2, OUT2, N2 = 64, 64, 256, 3
    kx, kw, kb, key = jax.random.split(key, 4)
    x2 = jax.random.normal(kx, (B2, IN2), jnp.float32)
    w2 = siren_init(kw, OUT2, IN2, is_first=False, omega=OMEGA)
    bb2 = 1.0 / np.sqrt(IN2)
    b2 = jax.random.uniform(kb, (OUT2,), jnp.float32, minval=-bb2, maxval=bb2)

    out2 = triangular_layer(x2, w2, b2, omega=OMEGA, n=N2)
    jax.block_until_ready(out2)
    np.testing.assert_allclose(np.asarray(out2),
                               np.asarray(_reference(x2, w2, b2, OMEGA, N2)),
                               rtol=1e-5, atol=1e-5)

    # Case 3: batched (leading-dim) input, mirroring nn.Linear on [..., in_f].
    B3, S3 = 4, 16
    kx, key = jax.random.split(key)
    x3 = jax.random.normal(kx, (B3, S3, IN_F), jnp.float32)
    out3 = triangular_layer(x3, weight, bias, omega=OMEGA, n=N)
    jax.block_until_ready(out3)
    np.testing.assert_allclose(
        np.asarray(out3),
        np.asarray(_reference(x3.reshape(-1, IN_F), weight, bias, OMEGA, N)
                   ).reshape(B3, S3, OUT_F),
        rtol=1e-5, atol=1e-5)

    print("KERNEL_OK")
</pallas_src>

<mosaic_0001>
module attributes {stable_mosaic.version = 11 : i64} {
  func.func @kernel(%arg0: i32, %arg1: i32, %arg2: memref<8x32xf32, #tpu.memory_space<vmem>>, %arg3: memref<128x32xf32, #tpu.memory_space<vmem>>, %arg4: memref<1x128xf32, #tpu.memory_space<vmem>>, %arg5: memref<8x128xf32, #tpu.memory_space<vmem>>) attributes {dimension_semantics = [#tpu.dimension_semantics<parallel>, #tpu.dimension_semantics<parallel>], iteration_bounds = array<i64: 1, 1>, scalar_prefetch = 0 : i64, scratch_operands = 0 : i64, tpu.core_type = #tpu.core_type<tc>, window_params = [{transform_indices = @transform_0, window_bounds = array<i64: 8, 32>}, {transform_indices = @transform_1, window_bounds = array<i64: 128, 32>}, {transform_indices = @transform_2, window_bounds = array<i64: 1, 128>}, {transform_indices = @transform_3, window_bounds = array<i64: 8, 128>}]} {
    %c0 = arith.constant 0 : index
    %c0_0 = arith.constant 0 : index
    %0 = vector.load %arg2[%c0, %c0_0] : memref<8x32xf32, #tpu.memory_space<vmem>>, vector<8x32xf32>
    %c0_1 = arith.constant 0 : index
    %c0_2 = arith.constant 0 : index
    %1 = vector.load %arg3[%c0_1, %c0_2] : memref<128x32xf32, #tpu.memory_space<vmem>>, vector<128x32xf32>
    %cst = arith.constant dense<0.000000e+00> : vector<8x128xf32>
    %2 = tpu.matmul %0, %1, %cst {dimension_numbers = #tpu.dot_dimension_numbers<[1], [1], [0], [0], [0, 0, 1, 0], [], []>} : vector<8x32xf32>, vector<128x32xf32>, vector<8x128xf32> -> vector<8x128xf32>
    %cst_3 = arith.constant 3.000000e+01 : f32
    %3 = vector.broadcast %cst_3 : f32 to vector<8x128xf32>
    %4 = arith.mulf %3, %2 : vector<8x128xf32>
    %c0_4 = arith.constant 0 : index
    %c0_5 = arith.constant 0 : index
    %5 = vector.load %arg4[%c0_4, %c0_5] : memref<1x128xf32, #tpu.memory_space<vmem>>, vector<1x128xf32>
    %6 = vector.broadcast %5 : vector<1x128xf32> to vector<8x128xf32>
    %7 = arith.addf %4, %6 : vector<8x128xf32>
    %8 = math.sin %7 : vector<8x128xf32>
    %cst_6 = arith.constant 0.810569465 : f32
    %9 = vector.broadcast %cst_6 : f32 to vector<8x128xf32>
    %10 = arith.mulf %9, %8 : vector<8x128xf32>
    %cst_7 = arith.constant 4.000000e+00 : f32
    %11 = vector.broadcast %cst_7 : f32 to vector<8x128xf32>
    %12 = arith.mulf %11, %8 : vector<8x128xf32>
    %13 = arith.mulf %12, %8 : vector<8x128xf32>
    %cst_8 = arith.constant 2.000000e+00 : f32
    %14 = vector.broadcast %cst_8 : f32 to vector<8x128xf32>
    %15 = arith.subf %14, %13 : vector<8x128xf32>
    %cst_9 = arith.constant 0.000000e+00 : f32
    %16 = vector.broadcast %cst_9 : f32 to vector<8x128xf32>
    %17 = arith.subf %16, %8 : vector<8x128xf32>
    %18 = arith.mulf %15, %8 : vector<8x128xf32>
    %19 = arith.subf %18, %17 : vector<8x128xf32>
    %cst_10 = arith.constant -0.0900632739 : f32
    %20 = vector.broadcast %cst_10 : f32 to vector<8x128xf32>
    %21 = arith.mulf %20, %19 : vector<8x128xf32>
    %22 = arith.addf %10, %21 : vector<8x128xf32>
    %c0_11 = arith.constant 0 : index
    %c0_12 = arith.constant 0 : index
    %23 = vector.load %arg5[%c0_11, %c0_12] : memref<8x128xf32, #tpu.memory_space<vmem>>, vector<8x128xf32>
    tpu.vector_store %arg5[%c0_11, %c0_12], %22 {strides = array<i32>} : memref<8x128xf32, #tpu.memory_space<vmem>>, vector<8x128xf32>,
    return
  }
  func.func @transform_0(%arg0: i32, %arg1: i32) -> (i32, i32) {
    %c0_i32 = arith.constant 0 : i32
    %c0_i32_0 = arith.constant 0 : i32
    return %arg0, %c0_i32 : i32, i32
  }
  func.func @transform_1(%arg0: i32, %arg1: i32) -> (i32, i32) {
    %c0_i32 = arith.constant 0 : i32
    %c0_i32_0 = arith.constant 0 : i32
    return %arg1, %c0_i32 : i32, i32
  }
  func.func @transform_2(%arg0: i32, %arg1: i32) -> (i32, i32) {
    %c0_i32 = arith.constant 0 : i32
    %c0_i32_0 = arith.constant 0 : i32
    return %c0_i32, %arg1 : i32, i32
  }
  func.func @transform_3(%arg0: i32, %arg1: i32) -> (i32, i32) {
    %c0_i32 = arith.constant 0 : i32
    return %arg0, %arg1 : i32, i32
  }
}

</mosaic_0001>

<bundles_post_ra>
// kernel: tpu_custom_call.1
= control target key start
LH: loop header
LB: loop body
LE: loop exit
PB: predicated region body
PF: predicated region fallthrough
CT: control target
= control target key end

     0   :  { %vm32_vm0 = vcmask 261120   ;;  %v439_v2 = vmov 0.0|0.0   ;;  %vm440_vm2 = vmmov 0   ;;  %v441_v5 = vmov 0.0   ;;  %s579_s0 = inlined_call_operand.vmem [shape: f32[8,32], index: 0, kind: input, shape index: {}]   ;;  %s580_s1 = inlined_call_operand.vmem [shape: f32[128,32], index: 1, kind: input, shape index: {}]   ;;  %s581_s2 = inlined_call_operand.vmem [shape: f32[1,128], index: 2, kind: input, shape index: {}]   ;;  %s582_s3 = inlined_call_operand.hbm [shape: f32[8,128], index: 3, kind: output, shape index: {}]  }
   0x1   :  { %v16_v0 = vld [vmem:[%s580_s1] sm:$0xff]  ;;  %v17_v1 = vld [vmem:[%s580_s1 + $0x8] sm:$0xff]  ;;  %365 = vmatprep.subr.bf16.mxu0 %v439_v2  ;;  %vm477_vm1 = vmpackc.low %vm32_vm0, %vm32_vm0  ;;  %362 = vmatprep.mubr.msk.f32.mxu0 %vm440_vm2, %v441_v5 }
   0x2   :  { %v366_v3 = vpack.c.bf16 %v17_v1, %v16_v0  ;;  %v18_v6 = vld [vmem:[%s580_s1 + $0x10] sm:$0xff]  ;;  %v19_v7 = vld [vmem:[%s580_s1 + $0x18] sm:$0xff] }
   0x4   :  { %368 = vmatpush3.bf16.xpose.msk.msra.mxu0 %vm477_vm1, %v366_v3 }
   0x5   :  { %369 = vmatprep.subr.bf16.mxu0 %v439_v2 }
   0x6   :  { %8 = vsyncpa [#allocation3], 0  ;;  %v370_v8 = vpack.c.bf16 %v19_v7, %v18_v6  ;;  %v20_v9 = vld [vmem:[%s580_s1 + $0x20] sm:$0xff]  ;;  %v21_v10 = vld [vmem:[%s580_s1 + $0x28] sm:$0xff]  ;;  %v442_v43 = vmov 683565275  }
   0x7   :  { %v374_v11 = vpack.c.bf16 %v21_v10, %v20_v9  ;;  %v22_v12 = vld [vmem:[%s580_s1 + $0x30] sm:$0xff]  ;;  %v23_v13 = vld [vmem:[%s580_s1 + $0x38] sm:$0xff]  ;;  %v24_v15 = vld [vmem:[%s580_s1 + $0x40] sm:$0xff]  ;;  %v443_v45 = vmov 2475754826  }
   0x8   :  { %v378_v14 = vpack.c.bf16 %v23_v13, %v22_v12  ;;  %v25_v16 = vld [vmem:[%s580_s1 + $0x48] sm:$0xff]  ;;  %v26_v18 = vld [vmem:[%s580_s1 + $0x50] sm:$0xff]  ;;  %v27_v19 = vld [vmem:[%s580_s1 + $0x58] sm:$0xff]  ;;  %v444_v48 = vmov 2131351028  }
   0x9   :  { %v382_v17 = vpack.c.bf16 %v25_v16, %v24_v15  ;;  %v386_v20 = vpack.c.bf16 %v27_v19, %v26_v18  ;;  %v28_v21 = vld [vmem:[%s580_s1 + $0x60] sm:$0xff]  ;;  %v29_v22 = vld [vmem:[%s580_s1 + $0x68] sm:$0xff]  ;;  %v30_v24 = vld [vmem:[%s580_s1 + $0x70] sm:$0xff]  ;;  %v445_v51 = vmov 2102212464  }
   0xa   :  { %v390_v23 = vpack.c.bf16 %v29_v22, %v28_v21  ;;  %v31_v25 = vld [vmem:[%s580_s1 + $0x78] sm:$0xff]  ;;  %v15_v27 = vld [vmem:[%s579_s0] sm:$0xff]  ;;  %v446_v54 = vmov 920167782   ;;  %v447_v57 = vmov 1326507024  }
   0xb   :  { %v394_v26 = vpack.c.bf16 %v31_v25, %v30_v24  ;;  %v308_v29 = vld [vmem:[%s581_s2] ss:$0 sm:$0xff]  ;;  %s448_s0 = smov [#allocation2]  }
   0xc   :  { %372 = vmatpush3.bf16.xpose.msk.msra.mxu0 %vm477_vm1, %v370_v8  ;;  %s283_s1 = sshll.u32 %s448_s0, 4  ;;  %s284_s1 = int_to_ptr.vmem [resolvable:$true] %s283_s1 }
   0xd   :  { %373 = vmatprep.subr.bf16.mxu0 %v439_v2  ;;  %s415_s2 = scalar_lea.vmem %s284_s1, 128  ;;  %p420_p1 = scmp.lt.s32.totalorder %s284_s1, %s284_s1 }
   0xe   :  { %p416_p0 = scmp.ne.s32.totalorder %s284_s1, %s415_s2  ;;  %p421_p2 = scmp.lt.s32.totalorder %s415_s2, %s415_s2 }
  0x10   :  { %p422_p3 = por %p421_p2, %p420_p1 }
  0x12   :  { %p423_p4 = pnand %p422_p3, %p416_p0 }
  0x14   :  { %376 = vmatpush3.bf16.xpose.msk.msra.mxu0 %vm477_vm1, %v374_v11 }
  0x15   :  { %377 = vmatprep.subr.bf16.mxu0 %v439_v2 }
  0x1c   :  { %380 = vmatpush3.bf16.xpose.msk.msra.mxu0 %vm477_vm1, %v378_v14 }
  0x1d   :  { %381 = vmatprep.subr.bf16.mxu0 %v439_v2 }
  0x24   :  { %384 = vmatpush3.bf16.xpose.msk.msra.mxu0 %vm477_vm1, %v382_v17 }
  0x25   :  { %385 = vmatprep.subr.bf16.mxu0 %v439_v2 }
  0x2c   :  { %388 = vmatpush3.bf16.xpose.msk.msra.mxu0 %vm477_vm1, %v386_v20 }
  0x2d   :  { %389 = vmatprep.subr.bf16.mxu0 %v439_v2 }
  0x34   :  { %392 = vmatpush3.bf16.xpose.msk.msra.mxu0 %vm477_vm1, %v390_v23 }
  0x35   :  { %393 = vmatprep.subr.bf16.mxu0 %v439_v2 }
  0x3c   :  { %396 = vmatpush3.bf16.xpose.msk.msra.mxu0 %vm477_vm1, %v394_v26 }
  0x43   :  { %363 = vmatmul.mubr.msk.f32.vlgmr.msra.gmra.mrb[0].mxu0 %vm32_vm0, %v15_v27 }
 0x116   :  { %v150_v28 = vpop.f32.mrb[0].mxu0 }
 0x117   :  { %v154_v30 = vmul.f32 30.0, %v150_v28  ;;  %v364_v31 = vpop.f32.mrb[1].mxu0 }
 0x119   :  { %v546_v32 = vadd.f32 %v308_v29, %v154_v30 }
 0x11b   :  { %v166_v33 = vand.u32 2139095040, %v546_v32  ;;  %v163_v37 = vand.u32 2147483647, %v546_v32  ;;  %vm165_vm10 = vcmp.lt.s32.totalorder %v546_v32, 0  ;;  %vm255_vm15 = vweird.f32 %v546_v32 }
 0x11d   :  { %v167_v34 = vshrl.u32 %v166_v33, 23  ;;  %v170_v40 = vand.u32 8388607, %v163_v37  ;;  %vm164_vm11 = vcmp.le.f32.partialorder %v163_v37, 0.7853982 }
 0x11f   :  { %v309_v35 = vadd.s32 4294967169, %v167_v34  ;;  %v171_v59 = vor.u32 8388608, %v170_v40 }
 0x121   :  { %v173_v36 = vadd.s32 1, %v309_v35  ;;  %v211_v9 = vshll.u32 %v171_v59, 8 }
 0x123   :  { %vm174_vm3 = vcmp.gt.s32.totalorder %v173_v36, 0 }
 0x124   :  { %v175_v38 = vsel %vm174_vm3, %v173_v36, 0 }
 0x125   :  { %v177_v39 = vand.u32 31, %v175_v38  ;;  %v176_v42 = vshrl.u32 %v175_v38, 5 }
 0x127   :  { %v178_v41 = vsub.s32 32, %v177_v39  ;;  %v180_v44 = vshll.u32 %v442_v43, %v177_v39  ;;  %v183_v46 = vshll.u32 %v443_v45, %v177_v39  ;;  %v186_v50 = vshll.u32 %v444_v48, %v177_v39 }
 0x128   :  { %v189_v53 = vshll.u32 %v445_v51, %v177_v39  ;;  %v192_v56 = vshll.u32 %v446_v54, %v177_v39  ;;  %vm195_vm4 = vcmp.lt.s32.totalorder %v176_v42, 1  ;;  %vm198_vm5 = vcmp.lt.s32.totalorder %v176_v42, 4 }
 0x129   :  { %v181_v47 = vshrl.u32 %v443_v45, %v178_v41  ;;  %v184_v49 = vshrl.u32 %v444_v48, %v178_v41  ;;  %v187_v52 = vshrl.u32 %v445_v51, %v178_v41  ;;  %v190_v55 = vshrl.u32 %v446_v54, %v178_v41 }
 0x12a   :  { %v193_v58 = vshrl.u32 %v447_v57, %v178_v41  ;;  %v179_v4 = vshrl.u32 %v442_v43, %v178_v41  ;;  %vm197_vm6 = vcmp.lt.s32.totalorder %v176_v42, 3  ;;  %vm196_vm7 = vcmp.lt.s32.totalorder %v176_v42, 2 }
 0x12b   :  { %v182_v60 = vor.u32 %v181_v47, %v180_v44  ;;  %v185_v61 = vor.u32 %v184_v49, %v183_v46  ;;  %v188_v62 = vor.u32 %v187_v52, %v186_v50  ;;  %v191_v63 = vor.u32 %v190_v55, %v189_v53 }
 0x12c   :  { %v194_v0 = vor.u32 %v193_v58, %v192_v56 }
 0x12d   :  { %v200_v1 = vsel %vm198_vm5, %v188_v62, 2102212464  ;;  %v203_v2 = vsel %vm195_vm4, %v182_v60, %v185_v61  ;;  %v207_v3 = vsel %vm195_vm4, %v185_v61, %v188_v62  ;;  %v204_v5 = vsel %vm198_vm5, %v191_v63, 920167782 }
 0x12e   :  { %v208_v6 = vsel %vm198_vm5, %v194_v0, 1326507024  ;;  %v205_v7 = vsel %vm197_vm6, %v188_v62, %v204_v5  ;;  %v199_v10 = vsel %vm195_vm4, %v179_v4, %v182_v60  ;;  %v201_v11 = vsel %vm197_vm6, %v185_v61, %v200_v1 }
 0x12f   :  { %v209_v8 = vsel %vm197_vm6, %v191_v63, %v208_v6  ;;  %v206_v12 = vsel %vm196_vm7, %v203_v2, %v205_v7  ;;  %v202_v18 = vsel %vm196_vm7, %v199_v10, %v201_v11 }
 0x130   :  { %v210_v13 = vsel %vm196_vm7, %v207_v3, %v209_v8  ;;  %v555_v16 = vmul.u32.u64.low %v211_v9, %v206_v12  ;;  %v556_v17 = vmul.u32.u64.high %v211_v9, %v206_v12, %v555_v16  ;;  %v218_v20 = vmul.u32 %v211_v9, %v202_v18 }
 0x131   :  { %v552_v14 = vmul.u32.u64.low %v211_v9, %v210_v13  ;;  %v553_v15 = vmul.u32.u64.high %v211_v9, %v210_v13, %v552_v14 }
 0x132   :  { %v221_v19 = vadd.s32 1, %v556_v17 }
 0x133   :  { %vm220_vm8 = vc.u32 %v553_v15, %v555_v16  ;;  %v219_v33 = vadd.s32 %v555_v16, %v553_v15 }
 0x134   :  { %v222_v21 = vsel %vm220_vm8, %v221_v19, %v556_v17 }
 0x135   :  { %v223_v22 = vadd.s32 %v222_v21, %v218_v20 }
 0x137   :  { %v224_v23 = vadd.s32 536870912, %v223_v22 }
 0x139   :  { %v225_v24 = vshrl.u32 %v224_v23, 30 }
 0x13b   :  { %v226_v25 = vshll.u32 %v225_v24, 30  ;;  %v249_v46 = vsub.s32 4, %v225_v24 }
 0x13d   :  { %v227_v26 = vsub.s32 %v223_v22, %v226_v25  ;;  %v250_v49 = vsel %vm165_vm10, %v249_v46, %v225_v24 }
 0x13e   :  { %v252_v51 = vsel %vm164_vm11, 0, %v250_v49 }
 0x13f   :  { %v229_v27 = vsub.s32 0, %v227_v26  ;;  %v256_v52 = vadd.s32 3, %v252_v51 }
 0x141   :  { %v310_v28 = vmin.u32 %v229_v27, %v227_v26  ;;  %v257_v53 = vand.u32 3, %v256_v52 }
 0x143   :  { %v231_v29 = vclz %v310_v28  ;;  %vm262_vm12 = vcmp.eq.s32.totalorder %v257_v53, 2  ;;  %vm259_vm13 = vcmp.eq.s32.totalorder %v257_v53, 0  ;;  %vm258_vm14 = vcmp.lt.s32.totalorder %v257_v53, 2 }
 0x145   :  { %v311_v30 = vadd.s32 4294967294, %v231_v29 }
 0x147   :  { %vm312_vm9 = vcmp.lt.s32.totalorder %v311_v30, 0 }
 0x148   :  { %v234_v31 = vsel %vm312_vm9, 0, %v311_v30 }
 0x149   :  { %v235_v34 = vsub.s32 32, %v234_v31  ;;  %v239_v35 = vsub.s32 4294967266, %v234_v31  ;;  %v236_v36 = vshll.u32 %v227_v26, %v234_v31 }
 0x14b   :  { %v237_v38 = vshrl.u32 %v219_v33, %v235_v34  ;;  %v240_v39 = vadd.s32 127, %v239_v35 }
 0x14d   :  { %v238_v40 = vor.u32 %v237_v38, %v236_v36  ;;  %v241_v41 = vshll.u32 %v240_v39, 23 }
 0x14f   :  { %v242_v42 = vor.u32 4788187, %v241_v41  ;;  %v245_v44 = vcvt.s32.f32 %v238_v40 }
 0x151   :  { %v243_v43 = vand.u32 2147483647, %v242_v42 }
 0x153   :  { %v246_v45 = vmul.f32 %v245_v44, %v243_v43 }
 0x155   :  { %v247_v47 = vxor.u32 2147483648, %v246_v45 }
 0x157   :  { %v248_v48 = vsel %vm165_vm10, %v247_v47, %v246_v45 }
 0x158   :  { %v251_v50 = vsel %vm164_vm11, %v546_v32, %v248_v48 }
 0x159   :  { %411 = vcosq.f32 %v251_v50 }
 0x15a   :  { %413 = vsinq.f32 %v251_v50 }
 0x163   :  { %v412_v54 = vpop.eup %411 }
 0x164   :  { %v414_v55 = vpop.eup %413  ;;  %v263_v56 = vxor.u32 2147483648, %v412_v54 }
 0x165   :  { %v260_v57 = vxor.u32 2147483648, %v414_v55 }
 0x166   :  { %v264_v58 = vsel %vm262_vm12, %v263_v56, %v414_v55 }
 0x167   :  { %v261_v59 = vsel %vm259_vm13, %v412_v54, %v260_v57 }
 0x168   :  { %v265_v37 = vsel %vm258_vm14, %v261_v59, %v264_v58 }
 0x169   :  { %v266_v60 = vsel %vm255_vm15, nan, %v265_v37 }
 0x16a   :  { %v268_v61 = vmul.f32 4.0, %v266_v60  ;;  %v271_v0 = vsub.f32 0.0, %v266_v60  ;;  %v267_v3 = vmul.f32 0.81056947, %v266_v60 }
 0x16c   :  { %v269_v62 = vmul.f32 %v268_v61, %v266_v60 }
 0x16e   :  { %v270_v63 = vsub.f32 2.0, %v269_v62 }
 0x170   :  { %v272_v1 = vmul.f32 %v270_v63, %v266_v60 }
 0x172   :  { %v273_v2 = vsub.f32 %v272_v1, %v271_v0 }
 0x174   :  { %v274_v4 = vmul.f32 -0.090063274, %v273_v2 }
 0x176   :  { %v275_v5 = vadd.f32 %v274_v4, %v267_v3 }
 0x178   :  { %276 = vst [vmem:[#allocation2] sm:$0xff] %v275_v5 }
 0x179   :  { %426 = shalt.err (!%p423_p4)
}
 0x17a   :  { %s427_s23 = scalar_lea.hbm %s582_s3, 128 }
 0x17b   :  { %p428_p5 = scmp.ne.s32.totalorder %s582_s3, %s427_s23  ;;  %p431_p6 = scmp.lt.u32.totalorder %s427_s23, %s582_s3 }
 0x17d   :  { %p433_p7 = pnand %p431_p6, %p428_p5 }
 0x17f   :  { %436 = shalt.err (!%p433_p7)
}
 0x180   :  { %286 = dma.vmem_to_hbm [thread:$0]  %s284_s1, 128, %s582_s3, [#allocation3]  }
 0x181   :  { %437 = dma.done.wait [#allocation3], 128  }
 0x182   :  { %438 = vsyncadd [#allocation3], 4294967168 }
 0x183   :  { %290 = vsyncpa [#allocation3], 1 }

</bundles_post_ra>
